<compile_context>
chip_gen: v6e
topology: v6e:2x2x1
jax: 0.10.0
libtpu: 0.0.40
codegen_flags: <defaults>
</compile_context>

<pallas_src>
import functools

import jax
import jax.numpy as jnp
from jax.experimental import pallas as pl
from jax.experimental.pallas import tpu as pltpu


# ----------------------------------------------------------------------------
# helpers
# ----------------------------------------------------------------------------
def get_padding(kernel_size, stride=1, dilation=1, mode="centered"):
    """cc.get_padding."""
    full = dilation * (kernel_size - 1) + 1 - stride
    if mode == "causal":
        return (full, 0)
    return (full // 2, full - full // 2)


def _round_up(x, m):
    return (x + m - 1) // m * m


def _cdiv(a, b):
    return -(-a // b)


# ----------------------------------------------------------------------------
# Kernel: one (batch, time-tile) step of the fused LeakyReLU + (transposed)
# conv.  The conv is one deep MXU matmul
#     y = W_full (s*co_pad, n_shifts*c_in) @ slab (n_shifts*c_in, tq)
# where `slab` stacks shifted views of the (masked, activated, bf16) input
# tile along the contraction axis and W_full is the phase/tap-packed weight.
# ----------------------------------------------------------------------------
def _upsample_conv_kernel(x_ref, halo_ref, w_ref, *rest, shifts, s, co_pad,
                          c_out, neg_slope, L, tq, has_bias):
    # x_ref   : (c_in, tq)              raw input tile (tail tile may read OOB)
    # halo_ref: (c_in, 4)               [x[base-2], x[base-1], x[base+tq], 0]
    # w_ref   : (s*co_pad, n*c_in) bf16 phase-packed tap-folded weights
    # b_ref   : (s*co_pad, 1)      f32  (only when has_bias)
    # o_ref   : (s, c_out, tq)          phased output: o[p, :, m] = y[:, m*s + p]
    if has_bias:
        b_ref, o_ref = rest
    else:
        (o_ref,) = rest

    j = pl.program_id(1)
    lane = jax.lax.broadcasted_iota(jnp.int32, (1, tq), 1)

    # Mask lanes past the (unpadded) end of the input, LeakyReLU in f32 on the
    # VPU, then drop to bf16 so the shift/slab copies move half the bytes.
    x0 = x_ref[...].astype(jnp.float32)
    x0 = jnp.where(lane < (L - j * tq), x0, 0.0)
    x0 = jnp.where(x0 >= 0, x0, neg_slope * x0).astype(jnp.bfloat16)

    h = halo_ref[...].astype(jnp.float32)
    h = jnp.where(h >= 0, h, neg_slope * h).astype(jnp.bfloat16)

    # Shifted views of the input tile (shift t <-> x[:, base + lane + t]).
    views = {0: x0}
    if -1 in shifts:
        views[-1] = jnp.concatenate([h[:, 1:2], x0[:, :-1]], axis=1)
    if -2 in shifts:
        views[-2] = jnp.concatenate([h[:, 0:2], x0[:, :-2]], axis=1)
    if 1 in shifts:
        views[1] = jnp.concatenate([x0[:, 1:], h[:, 2:3]], axis=1)

    # Single slab build + single MXU push per grid step.
    slab = jnp.concatenate([views[t] for t in shifts], axis=0)   # (n*c_in, tq)
    y = jnp.dot(w_ref[...], slab,
                preferred_element_type=jnp.float32)              # (s*co_pad, tq)
    if has_bias:
        y = y + b_ref[...]

    for p in range(s):                                           # static unroll
        o_ref[p] = y[p * co_pad:p * co_pad + c_out, :].astype(o_ref.dtype)


# ----------------------------------------------------------------------------
# Wrapper: halo side-table + weight packing (cheap, tiny) + pallas_call.
# ----------------------------------------------------------------------------
def upsample_layer_forward(x, params, *, ratio, padding_mode="centered",
                           negative_slope=0.2, tq=512, out_dtype=None):
    """x: (B, in_dim, L) -> (B, out_dim, L_out).
    params: {'w': torch-layout weight (weight norm already resolved), 'b': opt}."""
    assert tq % 128 == 0
    B, c_in, L = x.shape
    w = params["w"]
    b = params.get("b", None)
    s = int(ratio)
    out_dtype = out_dtype if out_dtype is not None else x.dtype

    if s > 1:
        # ConvTranspose1d(in, out, K=2s, stride=s, padding=P=s//2); w: (c_in, c_out, K)
        c_out = w.shape[1]
        K, P = 2 * s, s // 2
        l_out = (L - 1) * s - 2 * P + K
        shifts = (-1, 0, 1)
    else:
        # Conv1d(in, out, 3, padding=get_padding(3, mode)); w: (c_out, c_in, 3)
        c_out = w.shape[0]
        pad_l, pad_r = get_padding(3, mode=padding_mode)
        l_out = L + pad_l + pad_r - 2          # == L
        shifts = (-1, 0, 1) if pad_l == 1 else (-2, -1, 0)

    co_pad = _round_up(c_out, 16)              # bf16 sublane-packed row groups
    lq = _cdiv(l_out, s)                       # output columns per phase
    tq_eff = min(tq, _round_up(lq, 128))       # lane tile, multiple of 128
    n_tiles = _cdiv(lq, tq_eff)

    # Tiny halo side-table (no full-input copy): for tile j we need at most
    # columns x[j*tq-2], x[j*tq-1] (left) and x[(j+1)*tq] (right); OOB -> 0.
    xz = jnp.zeros((B, c_in, 1), x.dtype)
    l2 = x[:, :, tq_eff - 2::tq_eff][:, :, :n_tiles - 1]
    l1 = x[:, :, tq_eff - 1::tq_eff][:, :, :n_tiles - 1]
    left2 = jnp.concatenate([xz, l2], axis=2)
    left1 = jnp.concatenate([xz, l1], axis=2)
    r1 = x[:, :, tq_eff::tq_eff][:, :, :n_tiles]
    right1 = jnp.concatenate(
        [r1, jnp.zeros((B, c_in, n_tiles - r1.shape[2]), x.dtype)], axis=2)
    halo = jnp.stack(
        [left2, left1, right1, jnp.zeros((B, c_in, n_tiles), x.dtype)],
        axis=-1)                                              # (B, c_in, nt, 4)
    halo = jnp.transpose(halo, (0, 2, 1, 3))                  # (B, nt, c_in, 4)

    # Phase-packed, tap-folded, bf16 weights: one (s*co_pad, n_shifts*c_in)
    # slab, zero groups where a phase does not use a shift -> one fused dot.
    if s > 1:
        rows = []
        for p in range(s):                     # output column n = q*s + p
            r = (p + P) % s
            c = (p + P) // s                   # 0 or 1
            groups = {t: jnp.zeros((c_out, c_in), jnp.float32) for t in shifts}
            groups[c - 1] = w[:, :, r + s].T   # tap k = r+s  <- x[q + c - 1]
            groups[c] = w[:, :, r].T           # tap k = r    <- x[q + c]
            blk = jnp.concatenate([groups[t] for t in shifts], axis=1)
            rows.append(jnp.pad(blk, ((0, co_pad - c_out), (0, 0))))
        wp = jnp.concatenate(rows, axis=0).astype(jnp.bfloat16)
    else:
        wp = jnp.concatenate([w[:, :, 0], w[:, :, 1], w[:, :, 2]], axis=1)
        wp = jnp.pad(wp, ((0, co_pad - c_out), (0, 0))).astype(jnp.bfloat16)

    has_bias = b is not None
    inputs = [x, halo, wp]
    in_specs = [
        pl.BlockSpec((None, c_in, tq_eff), lambda bi, j: (bi, 0, j)),
        pl.BlockSpec((None, None, c_in, 4), lambda bi, j: (bi, j, 0, 0)),
        pl.BlockSpec(wp.shape, lambda bi, j: (0, 0)),          # resident weights
    ]
    if has_bias:
        bpad = jnp.pad(b.astype(jnp.float32), (0, co_pad - c_out))
        b_full = jnp.tile(bpad, s)[:, None]                    # (s*co_pad, 1)
        inputs.append(b_full)
        in_specs.append(pl.BlockSpec(b_full.shape, lambda bi, j: (0, 0)))

    kernel = functools.partial(
        _upsample_conv_kernel, shifts=shifts, s=s, co_pad=co_pad, c_out=c_out,
        neg_slope=negative_slope, L=L, tq=tq_eff, has_bias=has_bias)

    flops = 2 * B * n_tiles * tq_eff * (s * co_pad) * (len(shifts) * c_in)
    bytes_accessed = (x.size * x.dtype.itemsize
                      + halo.size * halo.dtype.itemsize
                      + wp.size * 2
                      + B * s * c_out * lq * jnp.dtype(out_dtype).itemsize)

    out_ph = pl.pallas_call(
        kernel,
        out_shape=jax.ShapeDtypeStruct((B, s, c_out, lq), out_dtype),
        grid=(B, n_tiles),
        in_specs=in_specs,
        out_specs=pl.BlockSpec((None, s, c_out, tq_eff),
                               lambda bi, j: (bi, 0, 0, j)),
        compiler_params=pltpu.CompilerParams(
            dimension_semantics=("parallel", "parallel"),
            vmem_limit_bytes=64 * 1024 * 1024),
        cost_estimate=pl.CostEstimate(flops=int(flops), transcendentals=0,
                                      bytes_accessed=int(bytes_accessed)),
    )(*inputs)

    if s > 1:
        # TODO(synk): fold this phase interleave into the kernel's store
        # (lane-interleave / sub-word pack); kept in glue for robustness.
        y = jnp.transpose(out_ph, (0, 2, 3, 1)).reshape(B, c_out, lq * s)
        if lq * s != l_out:
            y = y[:, :, :l_out]
        return y
    return out_ph.reshape(B, c_out, l_out)     # s == 1: free reshape


# ----------------------------------------------------------------------------
# Deterministic synthetic parameters (torch weight_norm, default dim=0,
# resolved to plain weights) and a pure-JAX reference for verification.
# ----------------------------------------------------------------------------
def init_upsample_params(key, in_dim, out_dim, ratio, bias=False):
    k1, k2, k3 = jax.random.split(key, 3)
    if ratio > 1:
        v = jax.random.normal(k1, (in_dim, out_dim, 2 * ratio), jnp.float32) * 0.1
    else:
        v = jax.random.normal(k1, (out_dim, in_dim, 3), jnp.float32) * 0.1
    g = jax.random.uniform(k2, (v.shape[0],), jnp.float32, 0.5, 1.5)
    norm = jnp.sqrt(jnp.sum(v * v, axis=(1, 2), keepdims=True))
    w = g[:, None, None] * v / norm
    params = {"w": w}
    if bias:
        params["b"] = jax.random.normal(k3, (out_dim,), jnp.float32) * 0.01
    return params


def upsample_layer_ref(x, params, *, ratio, padding_mode="centered",
                       negative_slope=0.2):
    h = jnp.where(x >= 0, x, negative_slope * x)
    w = params["w"]
    if ratio > 1:
        s = ratio
        K, P = 2 * s, s // 2
        # ConvTranspose1d == conv of the s-dilated input with the flipped,
        # (in, out)-swapped kernel and padding (K-1-P) on both sides.
        w_conv = jnp.transpose(jnp.flip(w, axis=-1), (1, 0, 2))
        y = jax.lax.conv_general_dilated(
            h, w_conv, window_strides=(1,), padding=[(K - 1 - P, K - 1 - P)],
            lhs_dilation=(s,), dimension_numbers=("NCH", "OIH", "NCH"))
    else:
        pad = get_padding(3, mode=padding_mode)
        y = jax.lax.conv_general_dilated(
            h, w, window_strides=(1,), padding=[pad],
            dimension_numbers=("NCH", "OIH", "NCH"))
    if params.get("b") is not None:
        y = y + params["b"][None, :, None]
    return y


if __name__ == "__main__":
    key = jax.random.PRNGKey(0)
    k1, k2, k3, k4 = jax.random.split(key, 4)

    # ratio > 1 branch: LeakyReLU -> wn(ConvTranspose1d(64, 32, 4, stride=2, padding=1))
    B, in_dim, out_dim, ratio, L = 2, 64, 32, 2, 200
    params = init_upsample_params(k1, in_dim, out_dim, ratio, bias=False)
    x = jax.random.normal(k2, (B, in_dim, L), jnp.float32)
    y = jax.block_until_ready(
        upsample_layer_forward(x, params, ratio=ratio, tq=128))
    y_ref = upsample_layer_ref(x, params, ratio=ratio)
    assert y.shape == y_ref.shape == (B, out_dim, L * ratio), (y.shape, y_ref.shape)
    err = float(jnp.max(jnp.abs(y - y_ref)))
    assert err < 5e-2, f"ratio>1 mismatch: {err}"

    # ratio == 1 branch: LeakyReLU -> wn(Conv1d(32, 24, 3, padding=(1, 1), bias=True))
    B2, in2, out2, L2 = 2, 32, 24, 150
    params2 = init_upsample_params(k3, in2, out2, 1, bias=True)
    x2 = jax.random.normal(k4, (B2, in2, L2), jnp.float32)
    y2 = jax.block_until_ready(
        upsample_layer_forward(x2, params2, ratio=1, tq=128))
    y2_ref = upsample_layer_ref(x2, params2, ratio=1)
    assert y2.shape == y2_ref.shape == (B2, out2, L2), (y2.shape, y2_ref.shape)
    err2 = float(jnp.max(jnp.abs(y2 - y2_ref)))
    assert err2 < 5e-2, f"ratio==1 mismatch: {err2}"

    print("KERNEL_OK")
</pallas_src>

<mosaic_0001>
module attributes {stable_mosaic.version = 11 : i64} {
  func.func @_upsample_conv_kernel(%arg0: i32, %arg1: i32, %arg2: memref<1x64x128xf32, #tpu.memory_space<vmem>>, %arg3: memref<1x1x64x4xf32, #tpu.memory_space<vmem>>, %arg4: memref<64x192xbf16, #tpu.memory_space<vmem>>, %arg5: memref<1x2x32x128xf32, #tpu.memory_space<vmem>>) attributes {dimension_semantics = [#tpu.dimension_semantics<parallel>, #tpu.dimension_semantics<parallel>], iteration_bounds = array<i64: 2, 2>, scalar_prefetch = 0 : i64, scratch_operands = 0 : i64, tpu.core_type = #tpu.core_type<tc>, window_params = [{transform_indices = @transform_0, window_bounds = array<i64: 1, 64, 128>}, {transform_indices = @transform_1, window_bounds = array<i64: 1, 1, 64, 4>}, {pipeline_mode = #tpu.pipeline_mode<synchronous>, transform_indices = @transform_2, window_bounds = array<i64: 64, 192>}, {transform_indices = @transform_3, window_bounds = array<i64: 1, 2, 32, 128>}]} {
    %0 = tpu.iota {dimensions = array<i32: 1>} : vector<1x128xi32>
    %c0 = arith.constant 0 : index
    %c0_0 = arith.constant 0 : index
    %c0_1 = arith.constant 0 : index
    %1 = vector.load %arg2[%c0, %c0_0, %c0_1] : memref<1x64x128xf32, #tpu.memory_space<vmem>>, vector<1x64x128xf32>
    %2 = vector.shape_cast %1 : vector<1x64x128xf32> to vector<64x128xf32>
    %c128_i32 = arith.constant 128 : i32
    %3 = arith.muli %arg1, %c128_i32 : i32
    %c200_i32 = arith.constant 200 : i32
    %4 = arith.subi %c200_i32, %3 : i32
    %5 = vector.broadcast %4 : i32 to vector<1x128xi32>
    %6 = arith.cmpi slt, %0, %5 : vector<1x128xi32>
    %cst = arith.constant 0.000000e+00 : f32
    %7 = vector.shape_cast %6 : vector<1x128xi1> to vector<1x128xi1>
    %8 = vector.broadcast %7 : vector<1x128xi1> to vector<64x128xi1>
    %9 = vector.broadcast %cst : f32 to vector<64x128xf32>
    %10 = arith.select %8, %2, %9 : vector<64x128xi1>, vector<64x128xf32>
    %cst_2 = arith.constant 0.000000e+00 : f32
    %11 = vector.broadcast %cst_2 : f32 to vector<64x128xf32>
    %12 = arith.cmpf oge, %10, %11 : vector<64x128xf32>
    %cst_3 = arith.constant 2.000000e-01 : f32
    %13 = vector.broadcast %cst_3 : f32 to vector<64x128xf32>
    %14 = arith.mulf %13, %10 : vector<64x128xf32>
    %15 = arith.select %12, %10, %14 : vector<64x128xi1>, vector<64x128xf32>
    %16 = arith.truncf %15 : vector<64x128xf32> to vector<64x128xbf16>
    %c0_4 = arith.constant 0 : index
    %c0_5 = arith.constant 0 : index
    %c0_6 = arith.constant 0 : index
    %c0_7 = arith.constant 0 : index
    %17 = vector.load %arg3[%c0_4, %c0_5, %c0_6, %c0_7] : memref<1x1x64x4xf32, #tpu.memory_space<vmem>>, vector<1x1x64x4xf32>
    %18 = vector.shape_cast %17 : vector<1x1x64x4xf32> to vector<64x4xf32>
    %cst_8 = arith.constant 0.000000e+00 : f32
    %19 = vector.broadcast %cst_8 : f32 to vector<64x4xf32>
    %20 = arith.cmpf oge, %18, %19 : vector<64x4xf32>
    %cst_9 = arith.constant 2.000000e-01 : f32
    %21 = vector.broadcast %cst_9 : f32 to vector<64x4xf32>
    %22 = arith.mulf %21, %18 : vector<64x4xf32>
    %23 = arith.select %20, %18, %22 : vector<64x4xi1>, vector<64x4xf32>
    %24 = arith.truncf %23 : vector<64x4xf32> to vector<64x4xbf16>
    %25 = vector.extract_strided_slice %24 {offsets = [0, 1], sizes = [64, 1], strides = [1, 1]} : vector<64x4xbf16> to vector<64x1xbf16>
    %26 = vector.extract_strided_slice %16 {offsets = [0, 0], sizes = [64, 127], strides = [1, 1]} : vector<64x128xbf16> to vector<64x127xbf16>
    %27 = tpu.concatenate %25, %26 in 1 : vector<64x1xbf16>, vector<64x127xbf16> -> vector<64x128xbf16>
    %28 = vector.extract_strided_slice %16 {offsets = [0, 1], sizes = [64, 127], strides = [1, 1]} : vector<64x128xbf16> to vector<64x127xbf16>
    %29 = vector.extract_strided_slice %24 {offsets = [0, 2], sizes = [64, 1], strides = [1, 1]} : vector<64x4xbf16> to vector<64x1xbf16>
    %30 = tpu.concatenate %28, %29 in 1 : vector<64x127xbf16>, vector<64x1xbf16> -> vector<64x128xbf16>
    %31 = tpu.concatenate %27, %16, %30 in 0 : vector<64x128xbf16>, vector<64x128xbf16>, vector<64x128xbf16> -> vector<192x128xbf16>
    %c0_10 = arith.constant 0 : index
    %c0_11 = arith.constant 0 : index
    %32 = vector.load %arg4[%c0_10, %c0_11] : memref<64x192xbf16, #tpu.memory_space<vmem>>, vector<64x192xbf16>
    %cst_12 = arith.constant dense<0.000000e+00> : vector<64x128xf32>
    %33 = tpu.matmul %32, %31, %cst_12 {dimension_numbers = #tpu.dot_dimension_numbers<[1], [0], [0], [1], [0, 0, 1, 1], [], []>} : vector<64x192xbf16>, vector<192x128xbf16>, vector<64x128xf32> -> vector<64x128xf32>
    %34 = vector.extract_strided_slice %33 {offsets = [0, 0], sizes = [32, 128], strides = [1, 1]} : vector<64x128xf32> to vector<32x128xf32>
    %c0_13 = arith.constant 0 : index
    %c0_14 = arith.constant 0 : index
    %c0_15 = arith.constant 0 : index
    %c0_16 = arith.constant 0 : index
    %35 = vector.load %arg5[%c0_13, %c0_14, %c0_15, %c0_16] : memref<1x2x32x128xf32, #tpu.memory_space<vmem>>, vector<1x1x32x128xf32>
    %36 = vector.shape_cast %35 : vector<1x1x32x128xf32> to vector<32x128xf32>
    %37 = vector.shape_cast %34 : vector<32x128xf32> to vector<1x1x32x128xf32>
    tpu.vector_store %arg5[%c0_13, %c0_14, %c0_15, %c0_16], %37 {strides = array<i32>} : memref<1x2x32x128xf32, #tpu.memory_space<vmem>>, vector<1x1x32x128xf32>,
    %38 = vector.extract_strided_slice %33 {offsets = [32, 0], sizes = [32, 128], strides = [1, 1]} : vector<64x128xf32> to vector<32x128xf32>
    %c0_17 = arith.constant 0 : index
    %c1 = arith.constant 1 : index
    %c0_18 = arith.constant 0 : index
    %c0_19 = arith.constant 0 : index
    %39 = vector.load %arg5[%c0_17, %c1, %c0_18, %c0_19] : memref<1x2x32x128xf32, #tpu.memory_space<vmem>>, vector<1x1x32x128xf32>
    %40 = vector.shape_cast %39 : vector<1x1x32x128xf32> to vector<32x128xf32>
    %41 = vector.shape_cast %38 : vector<32x128xf32> to vector<1x1x32x128xf32>
    tpu.vector_store %arg5[%c0_17, %c1, %c0_18, %c0_19], %41 {strides = array<i32>} : memref<1x2x32x128xf32, #tpu.memory_space<vmem>>, vector<1x1x32x128xf32>,
    return
  }
  func.func @transform_0(%arg0: i32, %arg1: i32) -> (i32, i32, i32) {
    %c0_i32 = arith.constant 0 : i32
    %c0_i32_0 = arith.constant 0 : i32
    return %arg0, %c0_i32, %arg1 : i32, i32, i32
  }
  func.func @transform_1(%arg0: i32, %arg1: i32) -> (i32, i32, i32, i32) {
    %c0_i32 = arith.constant 0 : i32
    %c0_i32_0 = arith.constant 0 : i32
    %c0_i32_1 = arith.constant 0 : i32
    return %arg0, %arg1, %c0_i32, %c0_i32_0 : i32, i32, i32, i32
  }
  func.func @transform_2(%arg0: i32, %arg1: i32) -> (i32, i32) {
    %c0_i32 = arith.constant 0 : i32
    %c0_i32_0 = arith.constant 0 : i32
    %c0_i32_1 = arith.constant 0 : i32
    return %c0_i32, %c0_i32_0 : i32, i32
  }
  func.func @transform_3(%arg0: i32, %arg1: i32) -> (i32, i32, i32, i32) {
    %c0_i32 = arith.constant 0 : i32
    %c0_i32_0 = arith.constant 0 : i32
    %c0_i32_1 = arith.constant 0 : i32
    return %arg0, %c0_i32, %c0_i32_0, %arg1 : i32, i32, i32, i32
  }
}

</mosaic_0001>

<bundles_post_ra>
// kernel: tpu_custom_call.1
= control target key start
LH: loop header
LB: loop body
LE: loop exit
PB: predicated region body
PF: predicated region fallthrough
CT: control target
= control target key end

     0   :  { %8 = vsyncpa [#allocation4], 0  ;;  %s1327_s0 = inlined_call_operand.vmem [shape: f32[2,64,200], index: 0, kind: input, shape index: {}]   ;;  %s1328_s1 = inlined_call_operand.vmem [shape: f32[2,2,64,4], index: 1, kind: input, shape index: {}]   ;;  %s1329_s2 = inlined_call_operand.hbm [shape: bf16[64,192], index: 2, kind: input, shape index: {}]   ;;  %s1330_s3 = inlined_call_operand.hbm [shape: f32[2,2,32,200], index: 3, kind: output, shape index: {}]  }
   0x1   :  { %9 = vsyncpa [#allocation5], 0 }
   0x2   :  { %11 = vsyncpa [#allocation5 + $0x1], 0  ;;  %s1043_s12 = smov 0   ;;  %s1045_s13 = smov 0  }
   0x3   :  { %s1047_s14 = smov 0   ;;  %s1049_s15 = smov 0  }
   0x4   :  { %s1051_s16 = smov 0   ;;  %s1053_s17 = smov 0  }
   0x5   :  { %s1055_s18 = smov 0   ;;  %s1057_s19 = smov 0  }
   0x6 LB: > { %s724_s20 = sadd.s32 4294967295, %s1010_s19   ;;  %s725_s21 = sadd.s32 4294967294, %s1010_s19   ;;  %s1010_s19 = sphi %s1057_s19, %s17_s19   ;;  %s1006_s18 = sphi %s1055_s18, %s1353_s18   ;;  %s1002_s17 = sphi %s1053_s17, %s1352_s17   ;;  %s998_s16 = sphi %s1051_s16, %s1351_s16   ;;  %s994_s15 = sphi %s1049_s15, %s1350_s15   ;;  %s990_s14 = sphi %s1047_s14, %s1349_s14   ;;  %s986_s13 = sphi %s1045_s13, %s1348_s13   ;;  %s982_s12 = sphi %s1043_s12, %s1347_s12  }
   0x7   : > { %s26_s22 = sadd.s32 1, %s1002_s17  ;;  %s29_s23 = sadd.s32 1, %s1006_s18 }
   0x8   : > { %p27_p0 = scmp.ge.s32.totalorder %s26_s22, 2  ;;  %s38_s24 = sadd.s32 1, %s990_s14 }
   0x9   : > { %p45_p1 = scmp.ne.s32.totalorder %s990_s14, %s986_s13  ;;  %p46_p2 = scmp.eq.s32.totalorder %s1010_s19, 0 }
   0xa   : > { %s1355_s22 = smov (%p27_p0, %s26_s22), 0  ;;  %s1357_s23 = smov (!%p27_p0, %s29_s23), %s1006_s18 }
   0xb   : > { %1334 = sst [smem:[#allocation9_spill]] %s1355_s22  ;;  %s34_s25 = ssub.s32 %s1002_s17, %s1355_s22 }
   0xc   : > { %p1096_p3 = por %p46_p2, %p45_p1  ;;  %p31_p4 = scmp.ge.s32.totalorder %s1357_s23, 2 }
   0xd   : > { %p126_p5 = scmp.eq.s32.totalorder %s724_s20, 3  ;;  %p131_p6 = scmp.ne.s32.totalorder %s986_s13, %s982_s12 }
   0xe   : > { %p132_p7 = scmp.eq.s32.totalorder %s725_s21, 3  ;;  %s1359_s23 = smov (%p31_p4, %s1357_s23), 0 }
   0xf   : > { %1336 = sst [smem:[#allocation10_spill]] %s1359_s23  ;;  %p1104_p8 = por %p126_p5, %p45_p1 }
  0x10   : > { %p1108_p9 = por %p132_p7, %p131_p6  ;;  %s33_s29 = ssub.s32 %s1006_s18, %s1359_s23 }
  0x11   : > { %s1337_s27 = scalar_select %p1104_p8, 1, 0 }
  0x12   : > { %s1338_s28 = scalar_select %p1108_p9, 1, 0 }
  0x13   : > { %p726_p10 = scmp.ge.s32.totalorder %s1010_s19, 1  ;;  %s35_s30 = sor.u32 %s34_s25, %s33_s29 }
  0x14   : > { %p139_p11 = scmp.lt.s32.totalorder %s1010_s19, 5  ;;  %p36_p12 = scmp.eq.s32.totalorder %s35_s30, 0 }
  0x15   : > { %p1120_p0 = scmp.eq.s32.totalorder %s724_s20, 0  ;;  %s1012_s7 = smov [#allocation3]  }
  0x16   : > { %p1116_p13 = pnand %p726_p10, %p139_p11  ;;  %s151_s8 = sshll.u32 %s1012_s7, 4  ;;  %s152_s8 = int_to_ptr.vmem [resolvable:$true] %s151_s8 }
  0x17   : > { %s1125_s6 = scalar_select %p36_p12, %s990_s14, %s38_s24  }
  0x18   : > { %p791_p1 = pneg %p1116_p13  ;;  %s899_s9 = scalar_lea.vmem %s152_s8, 1024 }
  0x19   : > { %p900_p5 = scmp.ne.s32.totalorder %s152_s8, %s899_s9  ;;  %p907_p10 = scmp.lt.s32.totalorder %s152_s8, %s152_s8 }
  0x1a   : > { %p792_p2 = pnand %p1120_p0, %p791_p1  ;;  %p908_p11 = scmp.lt.s32.totalorder %s899_s9, %s899_s9 }
  0x1c   : > { %p890_p4 = pneg %p792_p2  ;;  %p909_p9 = por %p908_p11, %p907_p10 }
  0x1e   : > { %p902_p6 = pnand %p900_p5, %p890_p4 }
  0x20   : > { %p903_p7 = pneg %p902_p6 }
  0x22   : > { %p910_p8 = pnand %p909_p9, %p903_p7 }
  0x24   : > { %913 = shalt.err (!%p910_p8)
}
  0x25   : > { %s1013_s10 = smov 128   ;;  %s1014_s11 = smov 8  }
  0x26   : > { %794 = dma.hbm_to_vmem [thread:$0]  (!%p792_p2), %s1329_s2, 1024, %s152_s8, [#allocation4], %s1013_s10, %s1013_s10, %s1014_s11  }
  0x27   : > { %p728_p12 = scmp.ge.s32.totalorder %s1010_s19, 4 }
  0x29   : > { %161 = sbr.rel (%p728_p12) target bundleno = 56 (0x38), region = 20 }
  0x2e   : > { %164 = sbr.rel (!%p1096_p3) target bundleno = 56 (0x38), region = 24  ;;  %s166_s24 = sand.u32 (%p1096_p3), 1, %s990_s14  }
  0x2f   : > { %s730_s25 = sshll.u32 (%p1096_p3), %s1006_s18, 4  ;;  %s729_s29 = sshll.u32 (%p1096_p3), %s166_s24, 6 }
  0x30   : > { %s170_s30 = sadd.s32 (%p1096_p3), %s1002_s17, %s730_s25  ;;  %s168_s8 = scalar_lea.vmem (%p1096_p3), [#allocation2], %s729_s29 }
  0x31   : > { %s731_s7 = sshll.u32 (%p1096_p3), %s170_s30, 3 }
  0x32   : > { %s172_s22 = scalar_lea.vmem (%p1096_p3), %s1327_s0, %s731_s7 }
  0x33   : > { %v215_v0 = vld [vmem:[%s172_s22] sm:$0xff]  ;;  %v217_v1 = vld [vmem:[%s172_s22 + $0x10] sm:$0xff] }
  0x34   : > { %v219_v2 = vld [vmem:[%s172_s22 + $0x20] sm:$0xff]  ;;  %216 = vst [vmem:[%s168_s8] sm:$0xff] %v215_v0  ;;  %218 = vst [vmem:[%s168_s8 + $0x8] sm:$0xff] %v217_v1  ;;  %v221_v3 = vld [vmem:[%s172_s22 + $0x30] sm:$0xff] }
  0x35   : > { %220 = vst [vmem:[%s168_s8 + $0x10] sm:$0xff] %v219_v2  ;;  %v223_v4 = vld [vmem:[%s172_s22 + $0x40] sm:$0xff]  ;;  %v225_v5 = vld [vmem:[%s172_s22 + $0x50] sm:$0xff]  ;;  %222 = vst [vmem:[%s168_s8 + $0x18] sm:$0xff] %v221_v3 }
  0x36   : > { %224 = vst [vmem:[%s168_s8 + $0x20] sm:$0xff] %v223_v4  ;;  %226 = vst [vmem:[%s168_s8 + $0x28] sm:$0xff] %v225_v5  ;;  %v227_v6 = vld [vmem:[%s172_s22 + $0x60] sm:$0xff]  ;;  %v229_v7 = vld [vmem:[%s172_s22 + $0x70] sm:$0xff] }
  0x37   : > { %228 = vst [vmem:[%s168_s8 + $0x30] sm:$0xff] %v227_v6  ;;  %230 = vst [vmem:[%s168_s8 + $0x38] sm:$0xff] %v229_v7 }
  0x38 PF: > { %251 = sbr.rel (%p1116_p13) target bundleno = 449 (0x1c1), region = 66  ;;  %s254_s23 = sand.u32 (!%p1116_p13), 1, %s986_s13  }
  0x39   : > { %s1148_s26 = sshll.u32 (!%p1116_p13), %s254_s23, 6 }
  0x3a   : > { %s1151_s10 = scalar_lea.vmem (!%p1116_p13), [#allocation2], %s1148_s26 }
  0x3d   : > { %973 = dma.done.wait (%p1120_p0), [#allocation4], 1024  }
  0x3e   : > { %975 = vsyncadd (%p1120_p0), [#allocation4], 4294966272  ;;  %p290_p3 = scmp.lt.s32.totalorder %s998_s16, 1  ;;  %p292_p8 = scmp.lt.s32.totalorder %s994_s15, 1  ;;  %v300_v8 = vlaneseq  ;;  %v1015_v9 = vmov 0   ;;  %v308_v13 = vld [vmem:[%s1151_s10 + $0x30] sm:$0xff] }
  0x3f   : > { %s739_s22 = sshll.u32 %s994_s15, 7  ;;  %519 = vmatprep.subr.bf16.mxu0 %v1015_v9  ;;  %761 = vmatprep.subr.bf16.mxu1 %v1015_v9  ;;  %v309_v14 = vld [vmem:[%s1151_s10 + $0x38] sm:$0xff]  ;;  %v306_v15 = vld [vmem:[%s1151_s10 + $0x20] sm:$0xff]  ;;  %v307_v18 = vld [vmem:[%s1151_s10 + $0x28] sm:$0xff]  ;;  %s1016_s9 = smov 127  }
  0x40   : > { %s291_s4 = scalar_select %p290_p3, %s998_s16, 1  ;;  %v301_v10 = vand.u32 127, %v300_v8  ;;  %v304_v38 = vld [vmem:[%s1151_s10 + $0x10] sm:$0xff]  ;;  %v305_v39 = vld [vmem:[%s1151_s10 + $0x18] sm:$0xff]  ;;  %v302_v56 = vld [vmem:[%s1151_s10] sm:$0xff] }
  0x41   : > { %s293_s5 = scalar_select %p292_p8, %s994_s15, 1  ;;  %v303_v57 = vld [vmem:[%s1151_s10 + $0x8] sm:$0xff] }
  0x42   : > { %s737_s11 = sshll.u32 %s291_s4, 4  ;;  %s311_s20 = ssub.s32 200, %s739_s22 }
  0x43   : > { %s736_s21 = sshll.u32 %s293_s5, 3  ;;  %v312_v11 = vstv %s311_s20  ;;  %s1017_s8 = smov 1  }
  0x44   : > { %s296_s24 = sadd.s32 %s737_s11, %s736_s21  ;;  %vm1164_vm0 = vcmp.lt.s32.totalorder %v301_v10, %v312_v11  ;;  %s1018_s10 = smov 125  }
  0x45   : > { %s738_s25 = sshll.u32 %s296_s24, 3  ;;  %v322_v16 = vsel %vm1164_vm0, %v308_v13, 0.0  ;;  %v323_v17 = vsel %vm1164_vm0, %v309_v14, 0.0  ;;  %v320_v19 = vsel %vm1164_vm0, %v306_v15, 0.0  ;;  %v321_v23 = vsel %vm1164_vm0, %v307_v18, 0.0  ;;  %s289_s22 = scalar_lea.vmem [#allocation6], %s1148_s26 }
  0x46   : > { %s1174_s7 = scalar_lea.vmem %s1328_s1, %s738_s25  ;;  %vm330_vm1 = vcmp.ge.f32.partialorder %v322_v16, 0.0  ;;  %vm331_vm2 = vcmp.ge.f32.partialorder %v323_v17, 0.0  ;;  %v338_v28 = vmul.f32 0.2, %v322_v16  ;;  %v339_v35 = vmul.f32 0.2, %v323_v17 }
  0x47   : > { %v358_v20 = vld [vmem:[%s1174_s7 + $0x30] sm:$0xff]  ;;  %v359_v21 = vld [vmem:[%s1174_s7 + $0x38] sm:$0xff]  ;;  %v356_v22 = vld [vmem:[%s1174_s7 + $0x20] sm:$0xff]  ;;  %vm328_vm7 = vcmp.ge.f32.partialorder %v320_v19, 0.0  ;;  %vm329_vm8 = vcmp.ge.f32.partialorder %v321_v23, 0.0  ;;  %v318_v51 = vsel %vm1164_vm0, %v304_v38, 0.0 }
  0x48   : > { %vm366_vm3 = vcmp.ge.f32.partialorder %v358_v20, 0.0  ;;  %vm367_vm4 = vcmp.ge.f32.partialorder %v359_v21, 0.0  ;;  %v374_v24 = vmul.f32 0.2, %v358_v20  ;;  %v375_v25 = vmul.f32 0.2, %v359_v21 }
  0x49   : > { %v357_v26 = vld [vmem:[%s1174_s7 + $0x28] sm:$0xff]  ;;  %vm364_vm5 = vcmp.ge.f32.partialorder %v356_v22, 0.0  ;;  %v372_v27 = vmul.f32 0.2, %v356_v22  ;;  %v354_v32 = vld [vmem:[%s1174_s7 + $0x10] sm:$0xff]  ;;  %v346_v36 = vsel %vm330_vm1, %v322_v16, %v338_v28  ;;  %v355_v37 = vld [vmem:[%s1174_s7 + $0x18] sm:$0xff]  ;;  %v347_v44 = vsel %vm331_vm2, %v323_v17, %v339_v35 }
  0x4a   : > { %v382_v29 = vsel %vm366_vm3, %v358_v20, %v374_v24  ;;  %v383_v30 = vsel %vm367_vm4, %v359_v21, %v375_v25  ;;  %vm365_vm6 = vcmp.ge.f32.partialorder %v357_v26, 0.0  ;;  %v373_v31 = vmul.f32 0.2, %v357_v26  ;;  %v352_v42 = vld [vmem:[%s1174_s7] sm:$0xff]  ;;  %v353_v53 = vld [vmem:[%s1174_s7 + $0x8] sm:$0xff]  ;;  %s757_s4 = sshll.u32 %s998_s16, 4 }
  0x4b   : > { %v1190_v33 = vpack.c.bf16 %v383_v30, %v382_v29  ;;  %v380_v34 = vsel %vm364_vm5, %v356_v22, %v372_v27  ;;  %v336_v41 = vmul.f32 0.2, %v320_v19  ;;  %v337_v45 = vmul.f32 0.2, %v321_v23  ;;  %v878_v14 = vld [vmem:[#allocation3 + $0x4] ss:$8 sps:$4 sm:$0xff]   ;;  %s605_s5 = sadd.s32 %s994_s15, %s757_s4 }
  0x4c   : > { %v381_v40 = vsel %vm365_vm6, %v357_v26, %v373_v31  ;;  %vm362_vm9 = vcmp.ge.f32.partialorder %v354_v32, 0.0  ;;  %v351_v46 = vpack.c.bf16 %v347_v44, %v346_v36  ;;  %vm363_vm10 = vcmp.ge.f32.partialorder %v355_v37, 0.0  ;;  %v881_v15 = vld [vmem:[#allocation3 + $0x24] ss:$8 sps:$4 sm:$0xff]   ;;  %v886_v44 = vld [vmem:[#allocation3 + $0x10] ss:$8 sps:$4 sm:$0xff]  }
  0x4d   : > { %398 = vrot.lane.b32.xlu0 %v1190_v33, %s1016_s9  ;;  %v1199_v43 = vpack.c.bf16 %v381_v40, %v380_v34  ;;  %v344_v47 = vsel %vm328_vm7, %v320_v19, %v336_v41  ;;  %v370_v48 = vmul.f32 0.2, %v354_v32  ;;  %v345_v49 = vsel %vm329_vm8, %v321_v23, %v337_v45  ;;  %v876_v40 = vld [vmem:[#allocation3] ss:$8 sps:$4 sm:$0xff]   ;;  %v887_v45 = vld [vmem:[#allocation3 + $0x30] ss:$8 sps:$4 sm:$0xff]  }
  0x4e   : > { %v371_v50 = vmul.f32 0.2, %v355_v37  ;;  %v319_v52 = vsel %vm1164_vm0, %v305_v39, 0.0  ;;  %v350_v54 = vpack.c.bf16 %v345_v49, %v344_v47  ;;  %vm326_vm11 = vcmp.ge.f32.partialorder %v318_v51, 0.0  ;;  %520 = vmatpush1.bf16.msra.mxu0 %v351_v46  ;;  %773 = vmatpush1.bf16.msra.mxu1 %v351_v46  ;;  %v879_v41 = vld [vmem:[#allocation3 + $0x20] ss:$8 sps:$4 sm:$0xff]  }
  0x4f   : > { %396 = vrot.lane.b32.xlu1 %v1199_v43, %s1016_s9  ;;  %v378_v55 = vsel %vm362_vm9, %v354_v32, %v370_v48  ;;  %vm327_vm12 = vcmp.ge.f32.partialorder %v319_v52, 0.0  ;;  %v334_v59 = vmul.f32 0.2, %v318_v51  ;;  %v335_v60 = vmul.f32 0.2, %v319_v52  ;;  %521 = vmatprep.subr.bf16.mxu0 %v1015_v9  ;;  %s608_s11 = sshll.u32 %s289_s22, 4  ;;  %s1267_s11 = int_to_ptr.vmem [resolvable:$true] %s608_s11 }
  0x50   : > { %v379_v58 = vsel %vm363_vm10, %v355_v37, %v371_v50  ;;  %vm360_vm13 = vcmp.ge.f32.partialorder %v352_v42, 0.0  ;;  %vm361_vm14 = vcmp.ge.f32.partialorder %v353_v53, 0.0  ;;  %v368_v62 = vmul.f32 0.2, %v352_v42  ;;  %762 = vmatprep.subr.bf16.mxu1 %v1015_v9  ;;  %s758_s20 = sshll.u32 %s605_s5, 7  ;;  %s1276_s21 = scalar_lea.sflag [#allocation5], %s254_s23 }
  0x51   : > { %410 = vrot.lane.b32.xlu0 %v351_v46, %s1017_s8  ;;  %v385_v61 = vpack.c.bf16 %v379_v58, %v378_v55  ;;  %v369_v63 = vmul.f32 0.2, %v353_v53  ;;  %v342_v0 = vsel %vm326_vm11, %v318_v51, %v334_v59  ;;  %v343_v1 = vsel %vm327_vm12, %v319_v52, %v335_v60  ;;  %s1272_s26 = scalar_lea.hbm %s1330_s3, %s758_s20  ;;  %s914_s24 = scalar_lea.vmem %s1267_s11, 1024 }
  0x52   : > { %v316_v2 = vsel %vm1164_vm0, %v302_v56, 0.0  ;;  %v317_v3 = vsel %vm1164_vm0, %v303_v57, 0.0  ;;  %v349_v4 = vpack.c.bf16 %v343_v1, %v342_v0  ;;  %v376_v5 = vsel %vm360_vm13, %v352_v42, %v368_v62  ;;  %522 = vmatpush1.bf16.msra.mxu0 %v350_v54  ;;  %774 = vmatpush1.bf16.msra.mxu1 %v350_v54  ;;  %v882_v42 = vld [vmem:[#allocation3 + $0x14] ss:$8 sps:$4 sm:$0xff]   ;;  %p915_p9 = scmp.ne.s32.totalorder %s1267_s11, %s914_s24  ;;  %p1343_p13 = scmp.ne.s32.totalorder %s1337_s27, 0 }
  0x53   : > { %408 = vrot.lane.b32.xlu1 %v350_v54, %s1017_s8  ;;  %v377_v6 = vsel %vm361_vm14, %v353_v53, %v369_v63  ;;  %vm324_vm15 = vcmp.ge.f32.partialorder %v316_v2, 0.0  ;;  %vm325_vm1 = vcmp.ge.f32.partialorder %v317_v3, 0.0  ;;  %v332_v8 = vmul.f32 0.2, %v316_v2  ;;  %523 = vmatprep.subr.bf16.mxu0 %v1015_v9  ;;  %s1019_s25 = smov [#allocation6]  }
  0x54   : > { %v384_v7 = vpack.c.bf16 %v377_v6, %v376_v5  ;;  %v333_v10 = vmul.f32 0.2, %v317_v3  ;;  %763 = vmatprep.subr.bf16.mxu1 %v1015_v9  ;;  %vm506_vm0 = vcmask 523264   ;;  %vm412_vm2 = vcmask 7168   ;;  %p916_p0 = pnand %p915_p9, %p1343_p13  ;;  %s918_s29 = sshll.u32 %s1019_s25, 4  ;;  %s919_s29 = int_to_ptr.vmem [resolvable:$false] %s918_s29 }
  0x55   : > { %394 = vrot.lane.b32.xlu0 %v385_v61, %s1016_s9  ;;  %v340_v11 = vsel %vm324_vm15, %v316_v2, %v332_v8  ;;  %748 = vmatprep.mubr.msk.bf16.mxu0 %vm506_vm0, %v878_v14  ;;  %vm445_vm3 = vcmask 1039360   ;;  %s920_s30 = scalar_lea.vmem %s919_s29, 2048  ;;  %p921_p2 = scmp.lt.s32.totalorder %s1267_s11, %s919_s29 }
  0x56   : > { %v341_v12 = vsel %vm325_vm1, %v317_v3, %v333_v10  ;;  %524 = vmatpush1.bf16.msra.mxu0 %v349_v4  ;;  %775 = vmatpush1.bf16.msra.mxu1 %v349_v4  ;;  %p917_p1 = pneg %p916_p0  ;;  %p922_p4 = scmp.lt.s32.totalorder %s920_s30, %s914_s24 }
  0x57   : > { %406 = vrot.lane.b32.xlu1 %v349_v4, %s1017_s8  ;;  %v348_v13 = vpack.c.bf16 %v341_v12, %v340_v11  ;;  %525 = vmatprep.subr.bf16.mxu0 %v1015_v9 }
  0x58   : > { %764 = vmatprep.subr.bf16.mxu1 %v1015_v9  ;;  %750 = vmatprep.mubr.msk.bf16.mxu1 %vm506_vm0, %v881_v15  ;;  %p923_p5 = por %p922_p4, %p921_p2 }
  0x59   : > { %392 = vrot.lane.b32.xlu0 %v384_v7, %s1016_s9 }
  0x5a   : > { %526 = vmatpush1.bf16.msra.mxu0 %v348_v13  ;;  %776 = vmatpush1.bf16.msra.mxu1 %v348_v13  ;;  %p924_p6 = pnand %p923_p5, %p917_p1 }
  0x5b   : > { %404 = vrot.lane.b32.xlu1 %v348_v13, %s1017_s8  ;;  %527 = vmatprep.subr.bf16.mxu0 %v1015_v9 }
  0x5c   : > { %765 = vmatprep.subr.bf16.mxu1 %v1015_v9 }
  0x5d   : > { %435 = vrot.lane.b32.xlu0 %v351_v46, %s1016_s9 }
  0x5f   : > { %443 = vrot.lane.b32.xlu1 %v1190_v33, %s1018_s10 }
  0x61   : > { %433 = vrot.lane.b32.xlu0 %v350_v54, %s1016_s9 }
  0x63   : > { %441 = vrot.lane.b32.xlu1 %v1199_v43, %s1018_s10  ;;  %v884_v43 = vld [vmem:[#allocation3 + $0x34] ss:$8 sps:$4 sm:$0xff]  }
  0x65   : > { %431 = vrot.lane.b32.xlu0 %v349_v4, %s1016_s9 }
  0x67   : > { %439 = vrot.lane.b32.xlu1 %v385_v61, %s1018_s10 }
  0x69   : > { %429 = vrot.lane.b32.xlu0 %v348_v13, %s1016_s9 }
  0x6b   : > { %437 = vrot.lane.b32.xlu1 %v384_v7, %s1018_s10 }
  0xbf   : > { %v399_v16 = vpop.permute.xlu0 %398 }
  0xc1   : > { %v397_v17 = vpop.permute.xlu1 %396 }
  0xc3   : > { %v411_v18 = vpop.permute.xlu0 %410 }
  0xc4   : > { %v427_v19 = vsel %vm412_vm2, %v399_v16, %v411_v18 }
  0xc5   : > { %v409_v20 = vpop.permute.xlu1 %408  ;;  %528 = vmatpush1.bf16.msra.mxu0 %v427_v19  ;;  %777 = vmatpush1.bf16.msra.mxu1 %v427_v19 }
  0xc6   : > { %529 = vmatprep.subr.bf16.mxu0 %v1015_v9  ;;  %766 = vmatprep.subr.bf16.mxu1 %v1015_v9  ;;  %v423_v22 = vsel %vm412_vm2, %v397_v17, %v409_v20 }
  0xc7   : > { %v395_v21 = vpop.permute.xlu0 %394 }
  0xc9   : > { %530 = vmatpush1.bf16.msra.mxu0 %v423_v22  ;;  %778 = vmatpush1.bf16.msra.mxu1 %v423_v22  ;;  %v407_v23 = vpop.permute.xlu1 %406 }
  0xca   : > { %531 = vmatprep.subr.bf16.mxu0 %v1015_v9  ;;  %767 = vmatprep.subr.bf16.mxu1 %v1015_v9  ;;  %v419_v24 = vsel %vm412_vm2, %v395_v21, %v407_v23 }
  0xcb   : > { %v393_v25 = vpop.permute.xlu0 %392 }
  0xcd   : > { %532 = vmatpush1.bf16.msra.mxu0 %v419_v24  ;;  %779 = vmatpush1.bf16.msra.mxu1 %v419_v24  ;;  %v405_v26 = vpop.permute.xlu1 %404 }
  0xce   : > { %533 = vmatprep.subr.bf16.mxu0 %v1015_v9  ;;  %768 = vmatprep.subr.bf16.mxu1 %v1015_v9  ;;  %v415_v27 = vsel %vm412_vm2, %v393_v25, %v405_v26 }
  0xcf   : > { %v436_v28 = vpop.permute.xlu0 %435 }
  0xd1   : > { %534 = vmatpush1.bf16.msra.mxu0 %v415_v27  ;;  %780 = vmatpush1.bf16.msra.mxu1 %v415_v27  ;;  %v444_v29 = vpop.permute.xlu1 %443 }
  0xd2   : > { %543 = vmatprep.subr.bf16.mxu0 %v1015_v9  ;;  %769 = vmatprep.subr.bf16.mxu1 %v1015_v9  ;;  %v460_v30 = vsel %vm445_vm3, %v436_v28, %v444_v29 }
  0xd3   : > { %v434_v31 = vpop.permute.xlu0 %433 }
  0xd5   : > { %544 = vmatpush2.bf16.msra.mxu0 %v460_v30  ;;  %781 = vmatpush2.bf16.msra.mxu1 %v460_v30  ;;  %v442_v32 = vpop.permute.xlu1 %441 }
  0xd6   : > { %545 = vmatprep.subr.bf16.mxu0 %v1015_v9  ;;  %770 = vmatprep.subr.bf16.mxu1 %v1015_v9  ;;  %v456_v33 = vsel %vm445_vm3, %v434_v31, %v442_v32 }
  0xd7   : > { %v432_v34 = vpop.permute.xlu0 %431 }
  0xd9   : > { %546 = vmatpush2.bf16.msra.mxu0 %v456_v33  ;;  %782 = vmatpush2.bf16.msra.mxu1 %v456_v33  ;;  %v440_v35 = vpop.permute.xlu1 %439 }
  0xda   : > { %547 = vmatprep.subr.bf16.mxu0 %v1015_v9  ;;  %771 = vmatprep.subr.bf16.mxu1 %v1015_v9  ;;  %v452_v36 = vsel %vm445_vm3, %v432_v34, %v440_v35 }
  0xdb   : > { %v430_v37 = vpop.permute.xlu0 %429 }
  0xdd   : > { %548 = vmatpush2.bf16.msra.mxu0 %v452_v36  ;;  %783 = vmatpush2.bf16.msra.mxu1 %v452_v36  ;;  %v438_v38 = vpop.permute.xlu1 %437 }
  0xde   : > { %549 = vmatprep.subr.bf16.mxu0 %v1015_v9  ;;  %772 = vmatprep.subr.bf16.mxu1 %v1015_v9  ;;  %v448_v39 = vsel %vm445_vm3, %v430_v37, %v438_v38 }
  0xe1   : > { %550 = vmatpush2.bf16.msra.mxu0 %v448_v39  ;;  %784 = vmatpush2.bf16.msra.mxu1 %v448_v39 }
  0xe4   : > { %552 = vmatmul.mubr.bf16.vlgmr.msra.gmra.mxu0 %v876_v40  ;;  %568 = vmatmul.mubr.bf16.vlgmr.msra.gmra.mxu1 %v879_v41 }
  0xe5   : > { %749 = vmatprep.mubr.msk.bf16.mxu0 %vm506_vm0, %v882_v42  ;;  %751 = vmatprep.mubr.msk.bf16.mxu1 %vm506_vm0, %v884_v43 }
  0xec   : > { %560 = vmatmul.mubr.bf16.gmra.mxu0 %v886_v44  ;;  %576 = vmatmul.mubr.bf16.gmra.mxu1 %v887_v45 }
 0x1a4   : > { %v553_v9 = vpop.f32.mrf.mxu0  ;;  %v569_v46 = vpop.f32.mrf.mxu1 }
 0x1a5   : > { %584 = vst [vmem:[%s289_s22] sm:$0xff] %v553_v9  ;;  %752 = vst [vmem:[%s289_s22 + $0x20] sm:$0xff] %v569_v46 }
 0x1a6   : > { %v555_v47 = vpop.f32.mrf.mxu0  ;;  %v571_v48 = vpop.f32.mrf.mxu1 }
 0x1a8   : > { %v556_v49 = vpop.f32.mrf.mxu0  ;;  %v572_v50 = vpop.f32.mrf.mxu1 }
 0x1a9   : > { %585 = vst [vmem:[%s289_s22 + $0x8] sm:$0xff] %v556_v49  ;;  %753 = vst [vmem:[%s289_s22 + $0x28] sm:$0xff] %v572_v50 }
 0x1aa   : > { %v558_v51 = vpop.f32.mrf.mxu0  ;;  %v574_v52 = vpop.f32.mrf.mxu1 }
 0x1ac   : > { %v561_v53 = vpop.f32.mrf.mxu0  ;;  %v577_v54 = vpop.f32.mrf.mxu1 }
 0x1ad   : > { %586 = vst [vmem:[%s289_s22 + $0x10] sm:$0xff] %v561_v53  ;;  %754 = vst [vmem:[%s289_s22 + $0x30] sm:$0xff] %v577_v54 }
 0x1ae   : > { %v563_v55 = vpop.f32.mrf.mxu0  ;;  %v579_v56 = vpop.f32.mrf.mxu1 }
 0x1b0   : > { %v564_v57 = vpop.f32.mrf.mxu0  ;;  %v580_v58 = vpop.f32.mrf.mxu1 }
 0x1b1   : > { %587 = vst [vmem:[%s289_s22 + $0x18] sm:$0xff] %v564_v57  ;;  %755 = vst [vmem:[%s289_s22 + $0x38] sm:$0xff] %v580_v58 }
 0x1b2   : > { %v566_v59 = vpop.f32.mrf.mxu0  ;;  %v582_v60 = vpop.f32.mrf.mxu1 }
 0x1b3   : > { %927 = shalt.err (!%p924_p6)
}
 0x1b4   : > { %s928_s23 = scalar_lea.hbm %s1272_s26, 1024  ;;  %s932_s8 = scalar_lea.hbm %s1330_s3, 4096 }
 0x1b5   : > { %p929_p7 = scmp.ne.s32.totalorder %s1272_s26, %s928_s23  ;;  %p933_p12 = scmp.lt.s32.totalorder %s1272_s26, %s1330_s3 }
 0x1b6   : > { %p934_p3 = scmp.lt.s32.totalorder %s932_s8, %s928_s23 }
 0x1b7   : > { %p930_p10 = pnand %p929_p7, %p1343_p13 }
 0x1b8   : > { %p935_p8 = por %p934_p3, %p933_p12 }
 0x1b9   : > { %p931_p11 = pneg %p930_p10 }
 0x1bb   : > { %p936_p9 = pnand %p935_p8, %p931_p11 }
 0x1bd   : > { %939 = shalt.err (!%p936_p9)
}
 0x1be   : > { %s1020_s4 = smov 128   ;;  %s1021_s5 = smov 256  }
 0x1bf   : > { %s1022_s20 = smov 8  }
 0x1c0   : > { %789 = dma.vmem_to_hbm [thread:$0]  (%p1343_p13), %s1267_s11, 1024, %s1272_s26, %s1276_s21, %s1020_s4, %s1021_s5, %s1022_s20  }
 0x1c1 PF: > { %p801_p0 = scmp.ge.s32.totalorder %s1010_s19, 2  ;;  %s623_s16 = sand.u32 1, %s982_s12  }
 0x1c2   : > { %p1344_p1 = scmp.ne.s32.totalorder %s1338_s28, 0  ;;  %s624_s15 = scalar_lea.sflag [#allocation5], %s623_s16 }
 0x1c4   : > { %p796_p2 = pnand %p801_p0, %p1344_p1 }
 0x1c6   : > { %p797_p4 = pneg %p796_p2 }
 0x1c8   : > { %977 = dma.done.wait (%p797_p4), %s624_s15, 1024  }
 0x1c9   : > { %979 = vsyncadd (%p797_p4), %s624_s15, 4294966272  ;;  %s17_s19 = sadd.s32 1, %s1010_s19   ;;  %s1345_s27 = sld [smem:[#allocation9_spill]] }
 0x1ca   : > { %p14_p5 = scmp.ge.s32.totalorder %s17_s19, 6   ;;  %s1346_s11 = sld [smem:[#allocation10_spill]] }
 0x1cb   : > { %s1347_s12 = smov %s986_s13  ;;  %s1348_s13 = smov %s990_s14 }
 0x1cc   : > { %s1349_s14 = smov %s1125_s6  ;;  %s1350_s15 = smov %s1002_s17 }
 0x1cd   : > { %s1351_s16 = smov %s1006_s18  ;;  %16 = sbr.rel (!%p14_p5) target bundleno = 6 (0x6), region = 119 }
 0x1cf   : > { %s1352_s17 = smov %s1345_s27 }
 0x1d0   : > { %s1353_s18 = smov %s1346_s11 }
 0x1d2   :  { %629 = vsyncpa [#allocation4], 1 }
 0x1d3   :  { %631 = vsyncpa [#allocation4 + $0x1], 1 }
 0x1d4   :  { %632 = vsyncpa [#allocation5], 1 }
 0x1d5   :  { %634 = vsyncpa [#allocation5 + $0x1], 1 }

</bundles_post_ra>
